<compile_context>
chip_gen: v7x
topology: tpu7x:2x2x1
jax: 0.10.0
libtpu: 0.0.40
codegen_flags: <defaults>
</compile_context>

<pallas_src>
import functools

import jax
import jax.numpy as jnp
from jax import lax
from jax.experimental import pallas as pl
from jax.experimental.pallas import tpu as pltpu

LANE = 128
_NEG_INF = -1e30


def _round_up(x, m):
    return ((x + m - 1) // m) * m


def _pad2(a, rows, cols):
    return jnp.pad(a, ((0, rows - a.shape[0]), (0, cols - a.shape[1])))


def _pick_tiles(n_pad):
    """Row tile tm (<=512, keep >=2 blocks for v7x megacore when possible) and
    reduction/column tile tk (<=2048), both multiples of 128 dividing n_pad."""
    def pick(cap):
        best = LANE
        t = LANE
        while t <= min(cap, n_pad):
            if n_pad % t == 0:
                best = t
            t += LANE
        return best

    tm = pick(512)
    if n_pad // tm < 2:
        tm = pick(max(LANE, n_pad // 2))
    tk = pick(2048)
    return tm, tk


def _vmem_budget(tm, tk, hid_pad, out_pad):
    """Explicit VMEM footprint (double buffers + accumulator + resident consts),
    2x margin, floored at 16 MiB and capped below v7x's 64 MiB physical VMEM."""
    a_db = 2 * tm * tk * 2                          # bf16 A double buffer
    p_db = 2 * tk * hid_pad * 2                     # bf16 XW/HW stream double buffer
    out_db = 2 * tm * max(hid_pad * 2, out_pad * 4)  # output double buffer
    acc = tm * max(hid_pad, out_pad) * 4             # f32 accumulator scratch
    consts = hid_pad * out_pad * 2 + 4 * (hid_pad + out_pad) * 4
    total = a_db + p_db + out_db + acc + consts
    return int(min(max(2 * total + (4 << 20), 16 << 20), 56 << 20))


# ---------------------------------------------------------------------------
# Kernels
# ---------------------------------------------------------------------------

def _xw_kernel(x_ref, w_ref, o_ref):
    """One-shot bf16 feature transform: o = x @ w (f32 MXU accumulation)."""
    o_ref[...] = jnp.dot(x_ref[...], w_ref[...],
                         preferred_element_type=jnp.float32).astype(o_ref.dtype)


def _agg_relu_kernel(a_ref, p_ref, b_ref, o_ref, acc_ref):
    """Streamed aggregation: o = relu(A_hat @ P + b), bf16 output.

    Grid = (row tiles, reduction tiles over A columns / P rows)."""
    k = pl.program_id(1)

    @pl.when(k == 0)
    def _():
        acc_ref[...] = jnp.zeros_like(acc_ref)

    # single native bf16 MXU pass per step, f32 accumulation
    acc_ref[...] += jnp.dot(a_ref[...], p_ref[...],
                            preferred_element_type=jnp.float32)

    @pl.when(k == pl.num_programs(1) - 1)
    def _():
        o_ref[...] = jnp.maximum(acc_ref[...] + b_ref[...], 0.0).astype(o_ref.dtype)


def _agg_fc_lsm_kernel(a_ref, p_ref, b2_ref, wf_ref, bf_ref,
                       o_ref, acc_ref, *, out_dim):
    """Streamed aggregation fused with the Linear head + masked log_softmax."""
    k = pl.program_id(1)

    @pl.when(k == 0)
    def _():
        acc_ref[...] = jnp.zeros_like(acc_ref)

    acc_ref[...] += jnp.dot(a_ref[...], p_ref[...],
                            preferred_element_type=jnp.float32)

    @pl.when(k == pl.num_programs(1) - 1)
    def _():
        h2 = jnp.maximum(acc_ref[...] + b2_ref[...], 0.0)
        z = jnp.dot(h2.astype(jnp.bfloat16), wf_ref[...],
                    preferred_element_type=jnp.float32) + bf_ref[...]
        # mask padded logit lanes so they do not pollute the softmax
        col = lax.broadcasted_iota(jnp.int32, z.shape, 1)
        z = jnp.where(col < out_dim, z, _NEG_INF)
        m = jnp.max(z, axis=1, keepdims=True)
        s = z - m
        lse = jnp.log(jnp.sum(jnp.exp(s), axis=1, keepdims=True))
        o_ref[...] = s - lse            # lane-dense store (last dim >= 128)


# ---------------------------------------------------------------------------
# pallas_call wrappers
# ---------------------------------------------------------------------------

def _precompute_xw(x_bf16, w_bf16, tp):
    """bf16 feature transform computed ONCE (hoisted out of the A stream)."""
    n_pad, f_pad = x_bf16.shape
    h_pad = w_bf16.shape[1]
    return pl.pallas_call(
        _xw_kernel,
        out_shape=jax.ShapeDtypeStruct((n_pad, h_pad), jnp.bfloat16),
        grid_spec=pltpu.PrefetchScalarGridSpec(
            num_scalar_prefetch=0,
            grid=(n_pad // tp,),
            in_specs=[pl.BlockSpec((tp, f_pad), lambda i: (i, 0)),
                      pl.BlockSpec((f_pad, h_pad), lambda i: (0, 0))],
            out_specs=pl.BlockSpec((tp, h_pad), lambda i: (i, 0)),
        ),
        compiler_params=pltpu.CompilerParams(
            dimension_semantics=("parallel",)),
    )(x_bf16, w_bf16)


def _stream_agg_relu(a_bf16, p_bf16, b, tm, tk, vmem_bytes):
    n_pad = a_bf16.shape[0]
    h_pad = p_bf16.shape[1]
    grid = (n_pad // tm, n_pad // tk)
    return pl.pallas_call(
        _agg_relu_kernel,
        out_shape=jax.ShapeDtypeStruct((n_pad, h_pad), jnp.bfloat16),
        grid_spec=pltpu.PrefetchScalarGridSpec(
            num_scalar_prefetch=0,
            grid=grid,
            in_specs=[pl.BlockSpec((tm, tk), lambda i, k: (i, k)),
                      pl.BlockSpec((tk, h_pad), lambda i, k: (k, 0)),
                      pl.BlockSpec((1, h_pad), lambda i, k: (0, 0))],
            out_specs=pl.BlockSpec((tm, h_pad), lambda i, k: (i, 0)),
            scratch_shapes=[pltpu.VMEM((tm, h_pad), jnp.float32)],
        ),
        compiler_params=pltpu.CompilerParams(
            dimension_semantics=("parallel", "arbitrary"),
            vmem_limit_bytes=vmem_bytes),
    )(a_bf16, p_bf16, b)


def _stream_agg_fc_lsm(a_bf16, p_bf16, b2, wf, bf, tm, tk, vmem_bytes, out_dim):
    n_pad = a_bf16.shape[0]
    h_pad = p_bf16.shape[1]
    out_pad = wf.shape[1]
    grid = (n_pad // tm, n_pad // tk)
    return pl.pallas_call(
        functools.partial(_agg_fc_lsm_kernel, out_dim=out_dim),
        out_shape=jax.ShapeDtypeStruct((n_pad, out_pad), jnp.float32),
        grid_spec=pltpu.PrefetchScalarGridSpec(
            num_scalar_prefetch=0,
            grid=grid,
            in_specs=[pl.BlockSpec((tm, tk), lambda i, k: (i, k)),
                      pl.BlockSpec((tk, h_pad), lambda i, k: (k, 0)),
                      pl.BlockSpec((1, h_pad), lambda i, k: (0, 0)),
                      pl.BlockSpec((h_pad, out_pad), lambda i, k: (0, 0)),
                      pl.BlockSpec((1, out_pad), lambda i, k: (0, 0))],
            out_specs=pl.BlockSpec((tm, out_pad), lambda i, k: (i, 0)),
            scratch_shapes=[pltpu.VMEM((tm, h_pad), jnp.float32)],
        ),
        compiler_params=pltpu.CompilerParams(
            dimension_semantics=("parallel", "arbitrary"),
            vmem_limit_bytes=vmem_bytes),
    )(a_bf16, p_bf16, b2, wf, bf)


# ---------------------------------------------------------------------------
# Full forward (one jit: adjacency build + pads + all kernels)
# ---------------------------------------------------------------------------

def _build_normalized_adjacency(edge_index, num_nodes, n_pad):
    """Dense padded bf16 D^-1/2 (A + I) D^-1/2 with PyG GCNConv semantics:
    A[dst, src] += 1 per (directed) edge, duplicates summed, self-loops added,
    degree = row sum; padded rows/cols stay exactly zero."""
    src, dst = edge_index[0], edge_index[1]
    a = jnp.zeros((n_pad, n_pad), jnp.float32)
    a = a.at[dst, src].add(1.0)
    idx = jnp.arange(num_nodes)
    a = a.at[idx, idx].add(1.0)
    deg = jnp.sum(a, axis=1)
    d_inv_sqrt = jnp.where(deg > 0, lax.rsqrt(deg), 0.0)
    return (d_inv_sqrt[:, None] * a * d_inv_sqrt[None, :]).astype(jnp.bfloat16)


@functools.partial(jax.jit, static_argnames=("num_nodes", "n_pad", "out_dim"))
def _graphnn_forward(x, edge_index, w1, b1, w2, b2, wf, bf,
                     *, num_nodes, n_pad, out_dim):
    fin_pad, hid_pad = w1.shape
    out_pad = wf.shape[1]

    a_hat = _build_normalized_adjacency(edge_index, num_nodes, n_pad)
    x_pad = _pad2(x, n_pad, fin_pad).astype(jnp.bfloat16)

    tm, tk = _pick_tiles(n_pad)
    vmem_bytes = _vmem_budget(tm, tk, hid_pad, out_pad)

    # layer 1: H1 = relu(A_hat @ (X @ W1) + b1)        (XW1 hoisted, bf16 H1)
    xw1 = _precompute_xw(x_pad, w1, tm)
    h1 = _stream_agg_relu(a_hat, xw1, b1, tm, tk, vmem_bytes)

    # layer 2 + head: log_softmax(relu(A_hat @ (H1 @ W2) + b2) @ Wf + bf)
    hw2 = _precompute_xw(h1, w2, tm)
    out = _stream_agg_fc_lsm(a_hat, hw2, b2, wf, bf, tm, tk, vmem_bytes, out_dim)

    return out[:num_nodes, :out_dim]


# ---------------------------------------------------------------------------
# Model glue
# ---------------------------------------------------------------------------

class GraphNNModelPallas:
    """JAX/Pallas port of GraphNN_Model. Parameters initialized deterministically."""

    def __init__(self, input_dim, hidden_dim, output_dim, key):
        self.input_dim = input_dim
        self.hidden_dim = hidden_dim
        self.output_dim = output_dim
        self.fin_pad = _round_up(input_dim, LANE)
        self.hid_pad = _round_up(hidden_dim, LANE)
        self.out_pad = _round_up(output_dim, LANE)

        k1, k2, k3, k4, k5, k6 = jax.random.split(key, 6)
        s1 = 1.0 / jnp.sqrt(input_dim)
        s2 = 1.0 / jnp.sqrt(hidden_dim)
        w1 = jax.random.uniform(k1, (input_dim, hidden_dim), jnp.float32, -s1, s1)
        b1 = jax.random.uniform(k2, (1, hidden_dim), jnp.float32, -s1, s1)
        w2 = jax.random.uniform(k3, (hidden_dim, hidden_dim), jnp.float32, -s2, s2)
        b2 = jax.random.uniform(k4, (1, hidden_dim), jnp.float32, -s2, s2)
        wf = jax.random.uniform(k5, (hidden_dim, output_dim), jnp.float32, -s2, s2)
        bf = jax.random.uniform(k6, (1, output_dim), jnp.float32, -s2, s2)

        # Zero-pad every parameter to 128-lane multiples; weights in bf16
        # (native MXU), biases in f32.  Padded hidden columns stay exactly
        # zero through bias+ReLU; padded logit lanes are masked in-kernel.
        self.w1 = _pad2(w1, self.fin_pad, self.hid_pad).astype(jnp.bfloat16)
        self.b1 = _pad2(b1, 1, self.hid_pad)
        self.w2 = _pad2(w2, self.hid_pad, self.hid_pad).astype(jnp.bfloat16)
        self.b2 = _pad2(b2, 1, self.hid_pad)
        self.wf = _pad2(wf, self.hid_pad, self.out_pad).astype(jnp.bfloat16)
        self.bf = _pad2(bf, 1, self.out_pad)

    def __call__(self, x, edge_index, batch=None):
        # `batch` is accepted for parity with the torch module; unused in forward.
        n = x.shape[0]
        n_pad = _round_up(n, LANE)
        return _graphnn_forward(
            x.astype(jnp.float32), edge_index.astype(jnp.int32),
            self.w1, self.b1, self.w2, self.b2, self.wf, self.bf,
            num_nodes=n, n_pad=n_pad, out_dim=self.output_dim)


if __name__ == "__main__":
    key = jax.random.PRNGKey(0)
    k_x, k_e, k_p = jax.random.split(key, 3)

    num_nodes, input_dim, hidden_dim, output_dim = 16, 8, 32, 8
    num_edges = 24

    x = jax.random.normal(k_x, (num_nodes, input_dim), jnp.float32)
    edge_index = jax.random.randint(k_e, (2, num_edges), 0, num_nodes, jnp.int32)
    batch = jnp.zeros((num_nodes,), jnp.int32)

    model = GraphNNModelPallas(input_dim, hidden_dim, output_dim, k_p)
    out = model(x, edge_index, batch)
    out = jax.block_until_ready(out)

    assert out.shape == (num_nodes, output_dim)
    # rows of log_softmax must exponentiate-sum to 1
    assert bool(jnp.allclose(jnp.sum(jnp.exp(out), axis=1), 1.0, atol=1e-3))
    print("KERNEL_OK")
</pallas_src>

<mosaic_0001>
module attributes {stable_mosaic.version = 11 : i64} {
  func.func private @main(%arg0: i32) attributes {dimension_semantics = [#tpu.dimension_semantics<core_parallel>], iteration_bounds = array<i64: 2>, tpu.core_type = #tpu.core_type<sc_scalar_subcore>, window_params = []} {
    return
  }
}

module attributes {stable_mosaic.version = 11 : i64} {
  func.func private @main(%arg0: i32) attributes {dimension_semantics = [#tpu.dimension_semantics<core_parallel>], iteration_bounds = array<i64: 2>, tpu.core_type = #tpu.core_type<sc_scalar_subcore>, window_params = []} {
    return
  }
}

module attributes {stable_mosaic.version = 11 : i64} {
  func.func @_xw_kernel(%arg0: i32, %arg1: memref<128x128xbf16, #tpu.memory_space<vmem>>, %arg2: memref<128x128xbf16, #tpu.memory_space<vmem>>, %arg3: memref<128x128xbf16, #tpu.memory_space<vmem>>) attributes {dimension_semantics = [#tpu.dimension_semantics<parallel>], iteration_bounds = array<i64: 1>, scalar_prefetch = 0 : i64, scratch_operands = 0 : i64, tpu.core_type = #tpu.core_type<tc>, window_params = [{transform_indices = @transform_0, window_bounds = array<i64: 128, 128>}, {pipeline_mode = #tpu.pipeline_mode<synchronous>, transform_indices = @transform_1, window_bounds = array<i64: 128, 128>}, {transform_indices = @transform_2, window_bounds = array<i64: 128, 128>}]} {
    %c0 = arith.constant 0 : index
    %c0_0 = arith.constant 0 : index
    %0 = vector.load %arg1[%c0, %c0_0] : memref<128x128xbf16, #tpu.memory_space<vmem>>, vector<128x128xbf16>
    %c0_1 = arith.constant 0 : index
    %c0_2 = arith.constant 0 : index
    %1 = vector.load %arg2[%c0_1, %c0_2] : memref<128x128xbf16, #tpu.memory_space<vmem>>, vector<128x128xbf16>
    %cst = arith.constant dense<0.000000e+00> : vector<128x128xf32>
    %2 = tpu.matmul %0, %1, %cst {dimension_numbers = #tpu.dot_dimension_numbers<[1], [0], [0], [1], [0, 0, 1, 1], [], []>} : vector<128x128xbf16>, vector<128x128xbf16>, vector<128x128xf32> -> vector<128x128xf32>
    %3 = arith.truncf %2 : vector<128x128xf32> to vector<128x128xbf16>
    %c0_3 = arith.constant 0 : index
    %c0_4 = arith.constant 0 : index
    %4 = vector.load %arg3[%c0_3, %c0_4] : memref<128x128xbf16, #tpu.memory_space<vmem>>, vector<128x128xbf16>
    tpu.vector_store %arg3[%c0_3, %c0_4], %3 {strides = array<i32>} : memref<128x128xbf16, #tpu.memory_space<vmem>>, vector<128x128xbf16>,
    return
  }
  func.func @transform_0(%arg0: i32) -> (i32, i32) {
    %c0_i32 = arith.constant 0 : i32
    %c0_i32_0 = arith.constant 0 : i32
    return %arg0, %c0_i32 : i32, i32
  }
  func.func @transform_1(%arg0: i32) -> (i32, i32) {
    %c0_i32 = arith.constant 0 : i32
    %c0_i32_0 = arith.constant 0 : i32
    %c0_i32_1 = arith.constant 0 : i32
    return %c0_i32, %c0_i32_0 : i32, i32
  }
  func.func @transform_2(%arg0: i32) -> (i32, i32) {
    %c0_i32 = arith.constant 0 : i32
    %c0_i32_0 = arith.constant 0 : i32
    return %arg0, %c0_i32 : i32, i32
  }
}

module attributes {stable_mosaic.version = 11 : i64} {
  func.func @_agg_fc_lsm_kernel(%arg0: i32, %arg1: i32, %arg2: memref<128x128xbf16, #tpu.memory_space<vmem>>, %arg3: memref<128x128xbf16, #tpu.memory_space<vmem>>, %arg4: memref<1x128xf32, #tpu.memory_space<vmem>>, %arg5: memref<128x128xbf16, #tpu.memory_space<vmem>>, %arg6: memref<1x128xf32, #tpu.memory_space<vmem>>, %arg7: memref<128x128xf32, #tpu.memory_space<vmem>>, %arg8: memref<128x128xf32, #tpu.memory_space<vmem>>) attributes {dimension_semantics = [#tpu.dimension_semantics<parallel>, #tpu.dimension_semantics<arbitrary>], iteration_bounds = array<i64: 1, 1>, scalar_prefetch = 0 : i64, scratch_operands = 1 : i64, tpu.core_type = #tpu.core_type<tc>, window_params = [{transform_indices = @transform_0, window_bounds = array<i64: 128, 128>}, {transform_indices = @transform_1, window_bounds = array<i64: 128, 128>}, {pipeline_mode = #tpu.pipeline_mode<synchronous>, transform_indices = @transform_2, window_bounds = array<i64: 1, 128>}, {pipeline_mode = #tpu.pipeline_mode<synchronous>, transform_indices = @transform_3, window_bounds = array<i64: 128, 128>}, {pipeline_mode = #tpu.pipeline_mode<synchronous>, transform_indices = @transform_4, window_bounds = array<i64: 1, 128>}, {transform_indices = @transform_5, window_bounds = array<i64: 128, 128>}]} {
    %c0_i32 = arith.constant 0 : i32
    %0 = arith.cmpi eq, %arg1, %c0_i32 : i32
    %1 = arith.extui %0 : i1 to i32
    %c0_i32_0 = arith.constant 0 : i32
    %2 = arith.cmpi ne, %1, %c0_i32_0 : i32
    scf.if %2 {
      %cst_10 = arith.constant 0.000000e+00 : f32
      %12 = vector.broadcast %cst_10 : f32 to vector<128x128xf32>
      %c0_11 = arith.constant 0 : index
      %c0_12 = arith.constant 0 : index
      %13 = vector.load %arg8[%c0_11, %c0_12] : memref<128x128xf32, #tpu.memory_space<vmem>>, vector<128x128xf32>
      tpu.vector_store %arg8[%c0_11, %c0_12], %12 {strides = array<i32>} : memref<128x128xf32, #tpu.memory_space<vmem>>, vector<128x128xf32>,
    } else {
    }
    %c0 = arith.constant 0 : index
    %c0_1 = arith.constant 0 : index
    %3 = vector.load %arg8[%c0, %c0_1] : memref<128x128xf32, #tpu.memory_space<vmem>>, vector<128x128xf32>
    %c0_2 = arith.constant 0 : index
    %c0_3 = arith.constant 0 : index
    %4 = vector.load %arg2[%c0_2, %c0_3] : memref<128x128xbf16, #tpu.memory_space<vmem>>, vector<128x128xbf16>
    %c0_4 = arith.constant 0 : index
    %c0_5 = arith.constant 0 : index
    %5 = vector.load %arg3[%c0_4, %c0_5] : memref<128x128xbf16, #tpu.memory_space<vmem>>, vector<128x128xbf16>
    %cst = arith.constant dense<0.000000e+00> : vector<128x128xf32>
    %6 = tpu.matmul %4, %5, %cst {dimension_numbers = #tpu.dot_dimension_numbers<[1], [0], [0], [1], [0, 0, 1, 1], [], []>} : vector<128x128xbf16>, vector<128x128xbf16>, vector<128x128xf32> -> vector<128x128xf32>
    %7 = arith.addf %3, %6 : vector<128x128xf32>
    %c0_6 = arith.constant 0 : index
    %c0_7 = arith.constant 0 : index
    %8 = vector.load %arg8[%c0_6, %c0_7] : memref<128x128xf32, #tpu.memory_space<vmem>>, vector<128x128xf32>
    tpu.vector_store %arg8[%c0_6, %c0_7], %7 {strides = array<i32>} : memref<128x128xf32, #tpu.memory_space<vmem>>, vector<128x128xf32>,
    %c0_i32_8 = arith.constant 0 : i32
    %9 = arith.cmpi eq, %arg1, %c0_i32_8 : i32
    %10 = arith.extui %9 : i1 to i32
    %c0_i32_9 = arith.constant 0 : i32
    %11 = arith.cmpi ne, %10, %c0_i32_9 : i32
    scf.if %11 {
      %c0_10 = arith.constant 0 : index
      %c0_11 = arith.constant 0 : index
      %12 = vector.load %arg8[%c0_10, %c0_11] : memref<128x128xf32, #tpu.memory_space<vmem>>, vector<128x128xf32>
      %c0_12 = arith.constant 0 : index
      %c0_13 = arith.constant 0 : index
      %13 = vector.load %arg4[%c0_12, %c0_13] : memref<1x128xf32, #tpu.memory_space<vmem>>, vector<1x128xf32>
      %14 = vector.broadcast %13 : vector<1x128xf32> to vector<128x128xf32>
      %15 = arith.addf %12, %14 : vector<128x128xf32>
      %cst_14 = arith.constant 0.000000e+00 : f32
      %16 = vector.broadcast %cst_14 : f32 to vector<128x128xf32>
      %17 = arith.maximumf %15, %16 : vector<128x128xf32>
      %18 = arith.truncf %17 : vector<128x128xf32> to vector<128x128xbf16>
      %c0_15 = arith.constant 0 : index
      %c0_16 = arith.constant 0 : index
      %19 = vector.load %arg5[%c0_15, %c0_16] : memref<128x128xbf16, #tpu.memory_space<vmem>>, vector<128x128xbf16>
      %cst_17 = arith.constant dense<0.000000e+00> : vector<128x128xf32>
      %20 = tpu.matmul %18, %19, %cst_17 {dimension_numbers = #tpu.dot_dimension_numbers<[1], [0], [0], [1], [0, 0, 1, 1], [], []>} : vector<128x128xbf16>, vector<128x128xbf16>, vector<128x128xf32> -> vector<128x128xf32>
      %c0_18 = arith.constant 0 : index
      %c0_19 = arith.constant 0 : index
      %21 = vector.load %arg6[%c0_18, %c0_19] : memref<1x128xf32, #tpu.memory_space<vmem>>, vector<1x128xf32>
      %22 = vector.broadcast %21 : vector<1x128xf32> to vector<128x128xf32>
      %23 = arith.addf %20, %22 : vector<128x128xf32>
      %24 = tpu.iota {dimensions = array<i32: 1>} : vector<128x128xi32>
      %c8_i32 = arith.constant 8 : i32
      %25 = vector.broadcast %c8_i32 : i32 to vector<128x128xi32>
      %26 = arith.cmpi slt, %24, %25 : vector<128x128xi32>
      %cst_20 = arith.constant -1.000000e+30 : f32
      %27 = vector.broadcast %cst_20 : f32 to vector<128x128xf32>
      %28 = arith.select %26, %23, %27 : vector<128x128xi1>, vector<128x128xf32>
      %cst_21 = arith.constant dense<0xFF800000> : vector<128xf32>
      %29 = vector.multi_reduction <maximumf>, %28, %cst_21 [1] : vector<128x128xf32> to vector<128xf32>
      %30 = vector.shape_cast %29 : vector<128xf32> to vector<128x1xf32>
      %31 = vector.broadcast %30 : vector<128x1xf32> to vector<128x128xf32>
      %32 = arith.subf %28, %31 : vector<128x128xf32>
      %33 = math.exp %32 : vector<128x128xf32>
      %cst_22 = arith.constant dense<0.000000e+00> : vector<128xf32>
      %34 = vector.multi_reduction <add>, %33, %cst_22 [1] : vector<128x128xf32> to vector<128xf32>
      %35 = vector.shape_cast %34 : vector<128xf32> to vector<128x1xf32>
      %36 = math.log %35 : vector<128x1xf32>
      %37 = vector.broadcast %36 : vector<128x1xf32> to vector<128x128xf32>
      %38 = arith.subf %32, %37 : vector<128x128xf32>
      %c0_23 = arith.constant 0 : index
      %c0_24 = arith.constant 0 : index
      %39 = vector.load %arg7[%c0_23, %c0_24] : memref<128x128xf32, #tpu.memory_space<vmem>>, vector<128x128xf32>
      tpu.vector_store %arg7[%c0_23, %c0_24], %38 {strides = array<i32>} : memref<128x128xf32, #tpu.memory_space<vmem>>, vector<128x128xf32>,
    } else {
    }
    return
  }
  func.func @transform_0(%arg0: i32, %arg1: i32) -> (i32, i32) {
    %c0_i32 = arith.constant 0 : i32
    return %arg0, %arg1 : i32, i32
  }
  func.func @transform_1(%arg0: i32, %arg1: i32) -> (i32, i32) {
    %c0_i32 = arith.constant 0 : i32
    %c0_i32_0 = arith.constant 0 : i32
    return %arg1, %c0_i32 : i32, i32
  }
  func.func @transform_2(%arg0: i32, %arg1: i32) -> (i32, i32) {
    %c0_i32 = arith.constant 0 : i32
    %c0_i32_0 = arith.constant 0 : i32
    %c0_i32_1 = arith.constant 0 : i32
    return %c0_i32, %c0_i32_0 : i32, i32
  }
  func.func @transform_3(%arg0: i32, %arg1: i32) -> (i32, i32) {
    %c0_i32 = arith.constant 0 : i32
    %c0_i32_0 = arith.constant 0 : i32
    %c0_i32_1 = arith.constant 0 : i32
    return %c0_i32, %c0_i32_0 : i32, i32
  }
  func.func @transform_4(%arg0: i32, %arg1: i32) -> (i32, i32) {
    %c0_i32 = arith.constant 0 : i32
    %c0_i32_0 = arith.constant 0 : i32
    %c0_i32_1 = arith.constant 0 : i32
    return %c0_i32, %c0_i32_0 : i32, i32
  }
  func.func @transform_5(%arg0: i32, %arg1: i32) -> (i32, i32) {
    %c0_i32 = arith.constant 0 : i32
    %c0_i32_0 = arith.constant 0 : i32
    return %arg0, %c0_i32 : i32, i32
  }
}

module attributes {stable_mosaic.version = 11 : i64} {
  func.func @_agg_relu_kernel(%arg0: i32, %arg1: i32, %arg2: memref<128x128xbf16, #tpu.memory_space<vmem>>, %arg3: memref<128x128xbf16, #tpu.memory_space<vmem>>, %arg4: memref<1x128xf32, #tpu.memory_space<vmem>>, %arg5: memref<128x128xbf16, #tpu.memory_space<vmem>>, %arg6: memref<128x128xf32, #tpu.memory_space<vmem>>) attributes {dimension_semantics = [#tpu.dimension_semantics<parallel>, #tpu.dimension_semantics<arbitrary>], iteration_bounds = array<i64: 1, 1>, scalar_prefetch = 0 : i64, scratch_operands = 1 : i64, tpu.core_type = #tpu.core_type<tc>, window_params = [{transform_indices = @transform_0, window_bounds = array<i64: 128, 128>}, {transform_indices = @transform_1, window_bounds = array<i64: 128, 128>}, {pipeline_mode = #tpu.pipeline_mode<synchronous>, transform_indices = @transform_2, window_bounds = array<i64: 1, 128>}, {transform_indices = @transform_3, window_bounds = array<i64: 128, 128>}]} {
    %c0_i32 = arith.constant 0 : i32
    %0 = arith.cmpi eq, %arg1, %c0_i32 : i32
    %1 = arith.extui %0 : i1 to i32
    %c0_i32_0 = arith.constant 0 : i32
    %2 = arith.cmpi ne, %1, %c0_i32_0 : i32
    scf.if %2 {
      %cst_10 = arith.constant 0.000000e+00 : f32
      %12 = vector.broadcast %cst_10 : f32 to vector<128x128xf32>
      %c0_11 = arith.constant 0 : index
      %c0_12 = arith.constant 0 : index
      %13 = vector.load %arg6[%c0_11, %c0_12] : memref<128x128xf32, #tpu.memory_space<vmem>>, vector<128x128xf32>
      tpu.vector_store %arg6[%c0_11, %c0_12], %12 {strides = array<i32>} : memref<128x128xf32, #tpu.memory_space<vmem>>, vector<128x128xf32>,
    } else {
    }
    %c0 = arith.constant 0 : index
    %c0_1 = arith.constant 0 : index
    %3 = vector.load %arg6[%c0, %c0_1] : memref<128x128xf32, #tpu.memory_space<vmem>>, vector<128x128xf32>
    %c0_2 = arith.constant 0 : index
    %c0_3 = arith.constant 0 : index
    %4 = vector.load %arg2[%c0_2, %c0_3] : memref<128x128xbf16, #tpu.memory_space<vmem>>, vector<128x128xbf16>
    %c0_4 = arith.constant 0 : index
    %c0_5 = arith.constant 0 : index
    %5 = vector.load %arg3[%c0_4, %c0_5] : memref<128x128xbf16, #tpu.memory_space<vmem>>, vector<128x128xbf16>
    %cst = arith.constant dense<0.000000e+00> : vector<128x128xf32>
    %6 = tpu.matmul %4, %5, %cst {dimension_numbers = #tpu.dot_dimension_numbers<[1], [0], [0], [1], [0, 0, 1, 1], [], []>} : vector<128x128xbf16>, vector<128x128xbf16>, vector<128x128xf32> -> vector<128x128xf32>
    %7 = arith.addf %3, %6 : vector<128x128xf32>
    %c0_6 = arith.constant 0 : index
    %c0_7 = arith.constant 0 : index
    %8 = vector.load %arg6[%c0_6, %c0_7] : memref<128x128xf32, #tpu.memory_space<vmem>>, vector<128x128xf32>
    tpu.vector_store %arg6[%c0_6, %c0_7], %7 {strides = array<i32>} : memref<128x128xf32, #tpu.memory_space<vmem>>, vector<128x128xf32>,
    %c0_i32_8 = arith.constant 0 : i32
    %9 = arith.cmpi eq, %arg1, %c0_i32_8 : i32
    %10 = arith.extui %9 : i1 to i32
    %c0_i32_9 = arith.constant 0 : i32
    %11 = arith.cmpi ne, %10, %c0_i32_9 : i32
    scf.if %11 {
      %c0_10 = arith.constant 0 : index
      %c0_11 = arith.constant 0 : index
      %12 = vector.load %arg6[%c0_10, %c0_11] : memref<128x128xf32, #tpu.memory_space<vmem>>, vector<128x128xf32>
      %c0_12 = arith.constant 0 : index
      %c0_13 = arith.constant 0 : index
      %13 = vector.load %arg4[%c0_12, %c0_13] : memref<1x128xf32, #tpu.memory_space<vmem>>, vector<1x128xf32>
      %14 = vector.broadcast %13 : vector<1x128xf32> to vector<128x128xf32>
      %15 = arith.addf %12, %14 : vector<128x128xf32>
      %cst_14 = arith.constant 0.000000e+00 : f32
      %16 = vector.broadcast %cst_14 : f32 to vector<128x128xf32>
      %17 = arith.maximumf %15, %16 : vector<128x128xf32>
      %18 = arith.truncf %17 : vector<128x128xf32> to vector<128x128xbf16>
      %c0_15 = arith.constant 0 : index
      %c0_16 = arith.constant 0 : index
      %19 = vector.load %arg5[%c0_15, %c0_16] : memref<128x128xbf16, #tpu.memory_space<vmem>>, vector<128x128xbf16>
      tpu.vector_store %arg5[%c0_15, %c0_16], %18 {strides = array<i32>} : memref<128x128xbf16, #tpu.memory_space<vmem>>, vector<128x128xbf16>,
    } else {
    }
    return
  }
  func.func @transform_0(%arg0: i32, %arg1: i32) -> (i32, i32) {
    %c0_i32 = arith.constant 0 : i32
    return %arg0, %arg1 : i32, i32
  }
  func.func @transform_1(%arg0: i32, %arg1: i32) -> (i32, i32) {
    %c0_i32 = arith.constant 0 : i32
    %c0_i32_0 = arith.constant 0 : i32
    return %arg1, %c0_i32 : i32, i32
  }
  func.func @transform_2(%arg0: i32, %arg1: i32) -> (i32, i32) {
    %c0_i32 = arith.constant 0 : i32
    %c0_i32_0 = arith.constant 0 : i32
    %c0_i32_1 = arith.constant 0 : i32
    return %c0_i32, %c0_i32_0 : i32, i32
  }
  func.func @transform_3(%arg0: i32, %arg1: i32) -> (i32, i32) {
    %c0_i32 = arith.constant 0 : i32
    %c0_i32_0 = arith.constant 0 : i32
    return %arg0, %c0_i32 : i32, i32
  }
}

</mosaic_0001>

<bundles_post_ra>
// kernel: _graphnn_forward.4
= control target key start
LH: loop header
LB: loop body
LE: loop exit
PB: predicated region body
PF: predicated region fallthrough
CT: control target
= control target key end

     0   :  { %s583_s1 = inlined_call_operand.vmem [shape: bf16[128,128], index: 1, kind: input, shape index: {}]   ;;  %s584_s0 = inlined_call_operand.vmem [shape: bf16[128,128], index: 0, kind: input, shape index: {}]   ;;  %s585_s2 = inlined_call_operand.vmem [shape: bf16[128,128], index: 2, kind: output, shape index: {}]  }
   0x1   :  { %v480_v0 = vld [vmem:[%s583_s1] sm:$0xff]   ;;  %v481_v1 = vld [vmem:[%s583_s1 + $0x8] sm:$0xff]   ;;  %v482_v2 = vld [vmem:[%s583_s1 + $0x10] sm:$0xff]  }
   0x2   :  { %432 = vmatprep.subr.bf16.mxu0 %v480_v0  ;;  %464 = vmatprep.subr.bf16.mxu1 %v480_v0  ;;  %v483_v3 = vld [vmem:[%s583_s1 + $0x18] sm:$0xff]   ;;  %v488_v4 = vld [vmem:[%s584_s0] sm:$0xff]   ;;  %v485_v7 = vld [vmem:[%s583_s1 + $0x28] sm:$0xff]  }
   0x3   :  { %433 = vmatpush3.bf16.msra.mxu0 %v480_v0  ;;  %472 = vmatpush3.bf16.msra.mxu1 %v480_v0  ;;  %v489_v5 = vld [vmem:[%s584_s0 + $0x20] sm:$0xff]   ;;  %v486_v8 = vld [vmem:[%s583_s1 + $0x30] sm:$0xff]   ;;  %v487_v9 = vld [vmem:[%s583_s1 + $0x38] sm:$0xff]  }
   0x4   :  { %434 = vmatprep.subr.bf16.mxu0 %v481_v1  ;;  %465 = vmatprep.subr.bf16.mxu1 %v481_v1  ;;  %v484_v6 = vld [vmem:[%s583_s1 + $0x20] sm:$0xff]   ;;  %v490_v10 = vld [vmem:[%s584_s0 + $0x8] sm:$0xff]   ;;  %v492_v12 = vld [vmem:[%s584_s0 + $0x10] sm:$0xff]  }
   0x5   :  { %448 = vmatprep.mubr.bf16.mxu0 %v488_v4  ;;  %456 = vmatprep.mubr.bf16.mxu1 %v489_v5  ;;  %v491_v11 = vld [vmem:[%s584_s0 + $0x28] sm:$0xff]   ;;  %v493_v13 = vld [vmem:[%s584_s0 + $0x30] sm:$0xff]   ;;  %v494_v14 = vld [vmem:[%s584_s0 + $0x18] sm:$0xff]  }
   0x6   :  { %v495_v15 = vld [vmem:[%s584_s0 + $0x38] sm:$0xff]  }
   0x7   :  { %435 = vmatpush3.bf16.msra.mxu0 %v481_v1  ;;  %473 = vmatpush3.bf16.msra.mxu1 %v481_v1 }
   0x8   :  { %436 = vmatprep.subr.bf16.mxu0 %v482_v2  ;;  %466 = vmatprep.subr.bf16.mxu1 %v482_v2 }
   0xb   :  { %437 = vmatpush3.bf16.msra.mxu0 %v482_v2  ;;  %474 = vmatpush3.bf16.msra.mxu1 %v482_v2 }
   0xc   :  { %438 = vmatprep.subr.bf16.mxu0 %v483_v3  ;;  %467 = vmatprep.subr.bf16.mxu1 %v483_v3 }
   0xf   :  { %439 = vmatpush3.bf16.msra.mxu0 %v483_v3  ;;  %475 = vmatpush3.bf16.msra.mxu1 %v483_v3 }
  0x10   :  { %440 = vmatprep.subr.bf16.mxu0 %v484_v6  ;;  %468 = vmatprep.subr.bf16.mxu1 %v484_v6 }
  0x13   :  { %441 = vmatpush3.bf16.msra.mxu0 %v484_v6  ;;  %476 = vmatpush3.bf16.msra.mxu1 %v484_v6 }
  0x14   :  { %442 = vmatprep.subr.bf16.mxu0 %v485_v7  ;;  %469 = vmatprep.subr.bf16.mxu1 %v485_v7 }
  0x17   :  { %443 = vmatpush3.bf16.msra.mxu0 %v485_v7  ;;  %477 = vmatpush3.bf16.msra.mxu1 %v485_v7 }
  0x18   :  { %444 = vmatprep.subr.bf16.mxu0 %v486_v8  ;;  %470 = vmatprep.subr.bf16.mxu1 %v486_v8 }
  0x1b   :  { %445 = vmatpush3.bf16.msra.mxu0 %v486_v8  ;;  %478 = vmatpush3.bf16.msra.mxu1 %v486_v8 }
  0x1c   :  { %446 = vmatprep.subr.bf16.mxu0 %v487_v9  ;;  %471 = vmatprep.subr.bf16.mxu1 %v487_v9 }
  0x1f   :  { %447 = vmatpush3.bf16.msra.mxu0 %v487_v9  ;;  %479 = vmatpush3.bf16.msra.mxu1 %v487_v9 }
  0x22   :  { %449 = vmatmul.mubr.bf16.vlgmr.msra.gmra.mrb[0].mxu0 %v490_v10  ;;  %457 = vmatmul.mubr.bf16.vlgmr.msra.gmra.mrb[0].mxu1 %v491_v11 }
  0x23   :  { %452 = vmatprep.mubr.bf16.mxu0 %v492_v12  ;;  %460 = vmatprep.mubr.bf16.mxu1 %v493_v13 }
  0x2a   :  { %453 = vmatmul.mubr.bf16.gmra.mrb[4].mxu0 %v494_v14  ;;  %461 = vmatmul.mubr.bf16.gmra.mrb[4].mxu1 %v495_v15 }
  0xf5   :  { %v450_v16 = vpop.f32.mrb[0].mxu0  ;;  %v458_v17 = vpop.f32.mrb[0].mxu1 }
  0xf6   :  { %v174_v18 = vpop.f32.mrb[1].mxu0  ;;  %v206_v19 = vpop.f32.mrb[1].mxu1 }
  0xf7   :  { %v451_v20 = vpop.f32.mrb[2].mxu0  ;;  %v459_v21 = vpop.f32.mrb[2].mxu1 }
  0xf8   :  { %v377_v22 = vpack.c.bf16 %v451_v20, %v450_v16  ;;  %v397_v23 = vpack.c.bf16 %v459_v21, %v458_v17  ;;  %v177_v24 = vpop.f32.mrb[3].mxu0  ;;  %v209_v25 = vpop.f32.mrb[3].mxu1 }
  0xf9   :  { %v372_v26 = vpack.c.bf16 %v177_v24, %v174_v18  ;;  %v392_v27 = vpack.c.bf16 %v209_v25, %v206_v19 }
  0xfa   :  { %409 = vst [vmem:[%s585_s2 + $0x8] sm:$0xff] %v377_v22   ;;  %413 = vst [vmem:[%s585_s2 + $0x28] sm:$0xff] %v397_v23  }
  0xfb   :  { %373 = vst [vmem:[%s585_s2] sm:$0xff] %v372_v26   ;;  %412 = vst [vmem:[%s585_s2 + $0x20] sm:$0xff] %v392_v27  }
  0xfd   :  { %v454_v28 = vpop.f32.mrb[4].mxu0  ;;  %v462_v29 = vpop.f32.mrb[4].mxu1 }
  0xfe   :  { %v190_v30 = vpop.f32.mrb[5].mxu0  ;;  %v222_v31 = vpop.f32.mrb[5].mxu1 }
  0xff   :  { %v455_v32 = vpop.f32.mrb[6].mxu0  ;;  %v463_v33 = vpop.f32.mrb[6].mxu1 }
 0x100   :  { %v387_v34 = vpack.c.bf16 %v455_v32, %v454_v28  ;;  %v407_v35 = vpack.c.bf16 %v463_v33, %v462_v29  ;;  %v193_v36 = vpop.f32.mrb[7].mxu0  ;;  %v225_v37 = vpop.f32.mrb[7].mxu1 }
 0x101   :  { %v382_v38 = vpack.c.bf16 %v193_v36, %v190_v30  ;;  %v402_v39 = vpack.c.bf16 %v225_v37, %v222_v31 }
 0x102   :  { %411 = vst [vmem:[%s585_s2 + $0x18] sm:$0xff] %v387_v34   ;;  %415 = vst [vmem:[%s585_s2 + $0x38] sm:$0xff] %v407_v35  }
 0x103   :  { %410 = vst [vmem:[%s585_s2 + $0x10] sm:$0xff] %v382_v38   ;;  %414 = vst [vmem:[%s585_s2 + $0x30] sm:$0xff] %v402_v39  }

// kernel: _graphnn_forward.5
= control target key start
LH: loop header
LB: loop body
LE: loop exit
PB: predicated region body
PF: predicated region fallthrough
CT: control target
= control target key end

     0   :  { %s721_s1 = inlined_call_operand.vmem [shape: bf16[128,128], index: 1, kind: input, shape index: {}]   ;;  %s722_s0 = inlined_call_operand.vmem [shape: bf16[128,128], index: 0, kind: input, shape index: {}]   ;;  %s723_s2 = inlined_call_operand.vmem [shape: f32[1,128], index: 2, kind: input, shape index: {}]   ;;  %s724_s3 = inlined_call_operand.vmem [shape: bf16[128,128], index: 3, kind: output, shape index: {}]  }
   0x1   :  { %v610_v0 = vld [vmem:[%s721_s1] sm:$0xff]   ;;  %v611_v1 = vld [vmem:[%s721_s1 + $0x8] sm:$0xff]   ;;  %v612_v2 = vld [vmem:[%s721_s1 + $0x10] sm:$0xff]  }
   0x2   :  { %562 = vmatprep.subr.bf16.mxu0 %v610_v0  ;;  %594 = vmatprep.subr.bf16.mxu1 %v610_v0  ;;  %v613_v3 = vld [vmem:[%s721_s1 + $0x18] sm:$0xff]   ;;  %v618_v4 = vld [vmem:[%s722_s0] sm:$0xff]   ;;  %v615_v7 = vld [vmem:[%s721_s1 + $0x28] sm:$0xff]  }
   0x3   :  { %563 = vmatpush3.bf16.msra.mxu0 %v610_v0  ;;  %602 = vmatpush3.bf16.msra.mxu1 %v610_v0  ;;  %v619_v5 = vld [vmem:[%s722_s0 + $0x20] sm:$0xff]   ;;  %v616_v8 = vld [vmem:[%s721_s1 + $0x30] sm:$0xff]   ;;  %v617_v9 = vld [vmem:[%s721_s1 + $0x38] sm:$0xff]  }
   0x4   :  { %564 = vmatprep.subr.bf16.mxu0 %v611_v1  ;;  %595 = vmatprep.subr.bf16.mxu1 %v611_v1  ;;  %v614_v6 = vld [vmem:[%s721_s1 + $0x20] sm:$0xff]   ;;  %v620_v10 = vld [vmem:[%s722_s0 + $0x8] sm:$0xff]   ;;  %v622_v12 = vld [vmem:[%s722_s0 + $0x10] sm:$0xff]  }
   0x5   :  { %578 = vmatprep.mubr.bf16.mxu0 %v618_v4  ;;  %586 = vmatprep.mubr.bf16.mxu1 %v619_v5  ;;  %v621_v11 = vld [vmem:[%s722_s0 + $0x28] sm:$0xff]   ;;  %v623_v13 = vld [vmem:[%s722_s0 + $0x30] sm:$0xff]   ;;  %v624_v14 = vld [vmem:[%s722_s0 + $0x18] sm:$0xff]  }
   0x6   :  { %v625_v15 = vld [vmem:[%s722_s0 + $0x38] sm:$0xff]   ;;  %v466_v16 = vld [vmem:[%s723_s2] ss:$0 sm:$0xff] }
   0x7   :  { %565 = vmatpush3.bf16.msra.mxu0 %v611_v1  ;;  %603 = vmatpush3.bf16.msra.mxu1 %v611_v1 }
   0x8   :  { %566 = vmatprep.subr.bf16.mxu0 %v612_v2  ;;  %596 = vmatprep.subr.bf16.mxu1 %v612_v2 }
   0xb   :  { %567 = vmatpush3.bf16.msra.mxu0 %v612_v2  ;;  %604 = vmatpush3.bf16.msra.mxu1 %v612_v2 }
   0xc   :  { %568 = vmatprep.subr.bf16.mxu0 %v613_v3  ;;  %597 = vmatprep.subr.bf16.mxu1 %v613_v3 }
   0xf   :  { %569 = vmatpush3.bf16.msra.mxu0 %v613_v3  ;;  %605 = vmatpush3.bf16.msra.mxu1 %v613_v3 }
  0x10   :  { %570 = vmatprep.subr.bf16.mxu0 %v614_v6  ;;  %598 = vmatprep.subr.bf16.mxu1 %v614_v6 }
  0x13   :  { %571 = vmatpush3.bf16.msra.mxu0 %v614_v6  ;;  %606 = vmatpush3.bf16.msra.mxu1 %v614_v6 }
  0x14   :  { %572 = vmatprep.subr.bf16.mxu0 %v615_v7  ;;  %599 = vmatprep.subr.bf16.mxu1 %v615_v7 }
  0x17   :  { %573 = vmatpush3.bf16.msra.mxu0 %v615_v7  ;;  %607 = vmatpush3.bf16.msra.mxu1 %v615_v7 }
  0x18   :  { %574 = vmatprep.subr.bf16.mxu0 %v616_v8  ;;  %600 = vmatprep.subr.bf16.mxu1 %v616_v8 }
  0x1b   :  { %575 = vmatpush3.bf16.msra.mxu0 %v616_v8  ;;  %608 = vmatpush3.bf16.msra.mxu1 %v616_v8 }
  0x1c   :  { %576 = vmatprep.subr.bf16.mxu0 %v617_v9  ;;  %601 = vmatprep.subr.bf16.mxu1 %v617_v9 }
  0x1f   :  { %577 = vmatpush3.bf16.msra.mxu0 %v617_v9  ;;  %609 = vmatpush3.bf16.msra.mxu1 %v617_v9 }
  0x22   :  { %579 = vmatmul.mubr.bf16.vlgmr.msra.gmra.mrb[0].mxu0 %v620_v10  ;;  %587 = vmatmul.mubr.bf16.vlgmr.msra.gmra.mrb[0].mxu1 %v621_v11 }
  0x23   :  { %582 = vmatprep.mubr.bf16.mxu0 %v622_v12  ;;  %590 = vmatprep.mubr.bf16.mxu1 %v623_v13 }
  0x2a   :  { %583 = vmatmul.mubr.bf16.gmra.mrb[4].mxu0 %v624_v14  ;;  %591 = vmatmul.mubr.bf16.gmra.mrb[4].mxu1 %v625_v15 }
  0xf5   :  { %v580_v17 = vpop.f32.mrb[0].mxu0  ;;  %v588_v18 = vpop.f32.mrb[0].mxu1 }
  0xf6   :  { %v336_v19 = vadd.f32 %v580_v17, %v466_v16  ;;  %v344_v20 = vadd.f32 %v588_v18, %v466_v16  ;;  %v213_v21 = vpop.f32.mrb[1].mxu0  ;;  %v245_v22 = vpop.f32.mrb[1].mxu1 }
  0xf7   :  { %v334_v23 = vadd.f32 %v466_v16, %v213_v21  ;;  %v342_v24 = vadd.f32 %v466_v16, %v245_v22  ;;  %v581_v25 = vpop.f32.mrb[2].mxu0  ;;  %v589_v26 = vpop.f32.mrb[2].mxu1 }
  0xf8   :  { %v337_v27 = vadd.f32 %v581_v25, %v466_v16  ;;  %v345_v28 = vadd.f32 %v589_v26, %v466_v16  ;;  %v216_v29 = vpop.f32.mrb[3].mxu0  ;;  %v248_v30 = vpop.f32.mrb[3].mxu1  ;;  %v352_v33 = vmax.f32 %v336_v19, 0.0  ;;  %v360_v34 = vmax.f32 %v344_v20, 0.0 }
  0xf9   :  { %v335_v31 = vadd.f32 %v466_v16, %v216_v29  ;;  %v343_v32 = vadd.f32 %v466_v16, %v248_v30  ;;  %v350_v37 = vmax.f32 %v334_v23, 0.0  ;;  %v358_v38 = vmax.f32 %v342_v24, 0.0 }
  0xfa   :  { %v353_v35 = vmax.f32 %v337_v27, 0.0  ;;  %v361_v36 = vmax.f32 %v345_v28, 0.0 }
  0xfb   :  { %v351_v39 = vmax.f32 %v335_v31, 0.0  ;;  %v359_v40 = vmax.f32 %v343_v32, 0.0 }
  0xfc   :  { %v507_v41 = vpack.c.bf16 %v353_v35, %v352_v33  ;;  %v527_v42 = vpack.c.bf16 %v361_v36, %v360_v34 }
  0xfd   :  { %v502_v43 = vpack.c.bf16 %v351_v39, %v350_v37  ;;  %v522_v44 = vpack.c.bf16 %v359_v40, %v358_v38  ;;  %v584_v45 = vpop.f32.mrb[4].mxu0  ;;  %v592_v46 = vpop.f32.mrb[4].mxu1 }
  0xfe   :  { %539 = vst [vmem:[%s724_s3 + $0x8] sm:$0xff] %v507_v41   ;;  %543 = vst [vmem:[%s724_s3 + $0x28] sm:$0xff] %v527_v42   ;;  %v340_v47 = vadd.f32 %v584_v45, %v466_v16  ;;  %v348_v48 = vadd.f32 %v592_v46, %v466_v16  ;;  %v229_v49 = vpop.f32.mrb[5].mxu0  ;;  %v261_v50 = vpop.f32.mrb[5].mxu1 }
  0xff   :  { %503 = vst [vmem:[%s724_s3] sm:$0xff] %v502_v43   ;;  %542 = vst [vmem:[%s724_s3 + $0x20] sm:$0xff] %v522_v44   ;;  %v338_v51 = vadd.f32 %v466_v16, %v229_v49  ;;  %v346_v52 = vadd.f32 %v466_v16, %v261_v50  ;;  %v585_v53 = vpop.f32.mrb[6].mxu0  ;;  %v593_v54 = vpop.f32.mrb[6].mxu1 }
 0x100   :  { %v341_v55 = vadd.f32 %v585_v53, %v466_v16  ;;  %v349_v56 = vadd.f32 %v593_v54, %v466_v16  ;;  %v232_v57 = vpop.f32.mrb[7].mxu0  ;;  %v264_v58 = vpop.f32.mrb[7].mxu1  ;;  %v356_v61 = vmax.f32 %v340_v47, 0.0  ;;  %v364_v62 = vmax.f32 %v348_v48, 0.0 }
 0x101   :  { %v339_v59 = vadd.f32 %v466_v16, %v232_v57  ;;  %v347_v60 = vadd.f32 %v466_v16, %v264_v58  ;;  %v354_v1 = vmax.f32 %v338_v51, 0.0  ;;  %v362_v2 = vmax.f32 %v346_v52, 0.0 }
 0x102   :  { %v357_v63 = vmax.f32 %v341_v55, 0.0  ;;  %v365_v0 = vmax.f32 %v349_v56, 0.0 }
 0x103   :  { %v355_v3 = vmax.f32 %v339_v59, 0.0  ;;  %v363_v4 = vmax.f32 %v347_v60, 0.0 }
 0x104   :  { %v517_v5 = vpack.c.bf16 %v357_v63, %v356_v61  ;;  %v537_v6 = vpack.c.bf16 %v365_v0, %v364_v62 }
 0x105   :  { %v512_v7 = vpack.c.bf16 %v355_v3, %v354_v1  ;;  %v532_v8 = vpack.c.bf16 %v363_v4, %v362_v2 }
 0x106   :  { %541 = vst [vmem:[%s724_s3 + $0x18] sm:$0xff] %v517_v5   ;;  %545 = vst [vmem:[%s724_s3 + $0x38] sm:$0xff] %v537_v6  }
 0x107   :  { %540 = vst [vmem:[%s724_s3 + $0x10] sm:$0xff] %v512_v7   ;;  %544 = vst [vmem:[%s724_s3 + $0x30] sm:$0xff] %v532_v8  }

// kernel: _graphnn_forward.7
= control target key start
LH: loop header
LB: loop body
LE: loop exit
PB: predicated region body
PF: predicated region fallthrough
CT: control target
= control target key end

     0   :  { %s1236_s1 = inlined_call_operand.vmem [shape: bf16[128,128], index: 1, kind: input, shape index: {}]   ;;  %s1237_s0 = inlined_call_operand.vmem [shape: bf16[128,128], index: 0, kind: input, shape index: {}]   ;;  %s1238_s3 = inlined_call_operand.vmem [shape: bf16[128,128], index: 3, kind: input, shape index: {}]   ;;  %s1239_s2 = inlined_call_operand.vmem [shape: f32[1,128], index: 2, kind: input, shape index: {}]   ;;  %s1240_s4 = inlined_call_operand.vmem [shape: f32[1,128], index: 4, kind: input, shape index: {}]   ;;  %s1241_s5 = inlined_call_operand.vmem [shape: f32[128,128], index: 5, kind: output, shape index: {}]  }
   0x1   :  { %v869_v0 = vld [vmem:[%s1236_s1] sm:$0xff]   ;;  %v870_v1 = vld [vmem:[%s1236_s1 + $0x8] sm:$0xff]   ;;  %v871_v2 = vld [vmem:[%s1236_s1 + $0x10] sm:$0xff]  }
   0x2   :  { %805 = vmatprep.subr.bf16.mxu0 %v869_v0  ;;  %v872_v3 = vld [vmem:[%s1236_s1 + $0x18] sm:$0xff]   ;;  %v877_v4 = vld [vmem:[%s1237_s0] sm:$0xff]   ;;  %v874_v6 = vld [vmem:[%s1236_s1 + $0x28] sm:$0xff]  }
   0x3   :  { %806 = vmatpush3.bf16.msra.mxu0 %v869_v0  ;;  %821 = vmatprep.mubr.bf16.mxu0 %v877_v4  ;;  %v873_v5 = vld [vmem:[%s1236_s1 + $0x20] sm:$0xff]   ;;  %v886_v8 = vld [vmem:[%s1238_s3 + $0x8] sm:$0xff]   ;;  %v875_v9 = vld [vmem:[%s1236_s1 + $0x30] sm:$0xff]  }
   0x4   :  { %807 = vmatprep.subr.bf16.mxu0 %v870_v1  ;;  %v885_v7 = vld [vmem:[%s1238_s3] sm:$0xff]   ;;  %v887_v10 = vld [vmem:[%s1238_s3 + $0x10] sm:$0xff]   ;;  %v876_v11 = vld [vmem:[%s1236_s1 + $0x38] sm:$0xff]  }
   0x5   :  { %837 = vmatprep.subr.bf16.mxu1 %v885_v7  ;;  %v888_v12 = vld [vmem:[%s1238_s3 + $0x18] sm:$0xff]   ;;  %v889_v13 = vld [vmem:[%s1238_s3 + $0x20] sm:$0xff]   ;;  %v878_v14 = vld [vmem:[%s1237_s0 + $0x8] sm:$0xff]  }
   0x6   :  { %838 = vmatpush3.bf16.msra.mxu1 %v885_v7  ;;  %v879_v15 = vld [vmem:[%s1237_s0 + $0x10] sm:$0xff]   ;;  %v890_v16 = vld [vmem:[%s1238_s3 + $0x28] sm:$0xff]   ;;  %v880_v17 = vld [vmem:[%s1237_s0 + $0x18] sm:$0xff]  }
   0x7   :  { %808 = vmatpush3.bf16.msra.mxu0 %v870_v1  ;;  %839 = vmatprep.subr.bf16.mxu1 %v886_v8  ;;  %v881_v18 = vld [vmem:[%s1237_s0 + $0x20] sm:$0xff]   ;;  %v882_v19 = vld [vmem:[%s1237_s0 + $0x28] sm:$0xff]   ;;  %v883_v20 = vld [vmem:[%s1237_s0 + $0x30] sm:$0xff]  }
   0x8   :  { %809 = vmatprep.subr.bf16.mxu0 %v871_v2  ;;  %v884_v21 = vld [vmem:[%s1237_s0 + $0x38] sm:$0xff]   ;;  %v891_v22 = vld [vmem:[%s1238_s3 + $0x30] sm:$0xff]   ;;  %v763_v24 = vld [vmem:[%s1239_s2] ss:$0 sm:$0xff] }
   0x9   :  { %v892_v23 = vld [vmem:[%s1238_s3 + $0x38] sm:$0xff]  }
   0xa   :  { %840 = vmatpush3.bf16.msra.mxu1 %v886_v8 }
   0xb   :  { %810 = vmatpush3.bf16.msra.mxu0 %v871_v2  ;;  %841 = vmatprep.subr.bf16.mxu1 %v887_v10 }
   0xc   :  { %811 = vmatprep.subr.bf16.mxu0 %v872_v3 }
   0xe   :  { %842 = vmatpush3.bf16.msra.mxu1 %v887_v10 }
   0xf   :  { %812 = vmatpush3.bf16.msra.mxu0 %v872_v3  ;;  %843 = vmatprep.subr.bf16.mxu1 %v888_v12 }
  0x10   :  { %813 = vmatprep.subr.bf16.mxu0 %v873_v5 }
  0x12   :  { %844 = vmatpush3.bf16.msra.mxu1 %v888_v12 }
  0x13   :  { %814 = vmatpush3.bf16.msra.mxu0 %v873_v5  ;;  %845 = vmatprep.subr.bf16.mxu1 %v889_v13 }
  0x14   :  { %815 = vmatprep.subr.bf16.mxu0 %v874_v6 }
  0x16   :  { %846 = vmatpush3.bf16.msra.mxu1 %v889_v13 }
  0x17   :  { %816 = vmatpush3.bf16.msra.mxu0 %v874_v6  ;;  %847 = vmatprep.subr.bf16.mxu1 %v890_v16 }
  0x18   :  { %817 = vmatprep.subr.bf16.mxu0 %v875_v9 }
  0x1a   :  { %848 = vmatpush3.bf16.msra.mxu1 %v890_v16 }
  0x1b   :  { %818 = vmatpush3.bf16.msra.mxu0 %v875_v9  ;;  %849 = vmatprep.subr.bf16.mxu1 %v891_v22 }
  0x1c   :  { %819 = vmatprep.subr.bf16.mxu0 %v876_v11 }
  0x1e   :  { %850 = vmatpush3.bf16.msra.mxu1 %v891_v22 }
  0x1f   :  { %820 = vmatpush3.bf16.msra.mxu0 %v876_v11  ;;  %851 = vmatprep.subr.bf16.mxu1 %v892_v23 }
  0x22   :  { %822 = vmatmul.mubr.bf16.vlgmr.msra.gmra.mrb[0].mxu0 %v878_v14  ;;  %852 = vmatpush3.bf16.msra.mxu1 %v892_v23 }
  0x23   :  { %825 = vmatprep.mubr.bf16.mxu0 %v879_v15 }
  0x2a   :  { %826 = vmatmul.mubr.bf16.gmra.mrb[4].mxu0 %v880_v17  ;;  %v548_v17 = vlaneseq }
  0x2b   :  { %829 = vmatprep.mubr.bf16.mxu0 %v881_v18 }
  0x2c   :  { %v1062_v18 = vand.u32 127, %v548_v17 }
  0x2e   :  { %vm550_vm0 = vcmp.lt.s32.totalorder %v1062_v18, 8 }
  0x32   :  { %830 = vmatmul.mubr.bf16.gmra.mrb[8].mxu0 %v882_v19  ;;  %v764_v19 = vld [vmem:[%s1240_s4] ss:$0 sm:$0xff] }
  0x33   :  { %833 = vmatprep.mubr.bf16.mxu0 %v883_v20 }
  0x3a   :  { %834 = vmatmul.mubr.bf16.gmra.mrb[12].mxu0 %v884_v21 }
  0xf5   :  { %v823_v25 = vpop.f32.mrb[0].mxu0 }
  0xf6   :  { %v342_v26 = vadd.f32 %v823_v25, %v763_v24  ;;  %v219_v27 = vpop.f32.mrb[1].mxu0 }
  0xf7   :  { %v340_v28 = vadd.f32 %v763_v24, %v219_v27  ;;  %v824_v29 = vpop.f32.mrb[2].mxu0 }
  0xf8   :  { %v343_v30 = vadd.f32 %v824_v29, %v763_v24  ;;  %v222_v31 = vpop.f32.mrb[3].mxu0  ;;  %v358_v33 = vmax.f32 %v342_v26, 0.0 }
  0xf9   :  { %v341_v32 = vadd.f32 %v763_v24, %v222_v31  ;;  %v356_v35 = vmax.f32 %v340_v28, 0.0 }
  0xfa   :  { %v359_v34 = vmax.f32 %v343_v30, 0.0 }
  0xfb   :  { %v357_v36 = vmax.f32 %v341_v32, 0.0 }
  0xfc   :  { %v373_v37 = vpack.c.bf16 %v359_v34, %v358_v33 }
  0xfd   :  { %v827_v38 = vpop.f32.mrb[4].mxu0  ;;  %v372_v39 = vpack.c.bf16 %v357_v36, %v356_v35 }
  0xfe   :  { %v346_v40 = vadd.f32 %v827_v38, %v763_v24  ;;  %v235_v41 = vpop.f32.mrb[5].mxu0 }
  0xff   :  { %v344_v42 = vadd.f32 %v763_v24, %v235_v41  ;;  %v828_v43 = vpop.f32.mrb[6].mxu0  ;;  %853 = vmatprep.mubr.bf16.mxu1 %v372_v39 }
 0x100   :  { %v362_v44 = vmax.f32 %v346_v40, 0.0  ;;  %v347_v45 = vadd.f32 %v828_v43, %v763_v24  ;;  %v238_v46 = vpop.f32.mrb[7].mxu0  ;;  %854 = vmatmul.mubr.bf16.vlgmr.msra.gmra.mrb[0].mxu1 %v373_v37 }
 0x101   :  { %v345_v47 = vadd.f32 %v763_v24, %v238_v46  ;;  %v360_v49 = vmax.f32 %v344_v42, 0.0 }
 0x102   :  { %v363_v48 = vmax.f32 %v347_v45, 0.0 }
 0x103   :  { %v361_v50 = vmax.f32 %v345_v47, 0.0 }
 0x104   :  { %v375_v51 = vpack.c.bf16 %v363_v48, %v362_v44 }
 0x105   :  { %v374_v52 = vpack.c.bf16 %v361_v50, %v360_v49  ;;  %v831_v53 = vpop.f32.mrb[8].mxu0 }
 0x106   :  { %v350_v54 = vadd.f32 %v831_v53, %v763_v24  ;;  %v251_v55 = vpop.f32.mrb[9].mxu0 }
 0x107   :  { %v348_v56 = vadd.f32 %v763_v24, %v251_v55  ;;  %v832_v57 = vpop.f32.mrb[10].mxu0  ;;  %857 = vmatprep.mubr.bf16.mxu1 %v374_v52 }
 0x108   :  { %v366_v58 = vmax.f32 %v350_v54, 0.0  ;;  %v351_v59 = vadd.f32 %v832_v57, %v763_v24  ;;  %v254_v60 = vpop.f32.mrb[11].mxu0  ;;  %858 = vmatmul.mubr.bf16.gmra.mrb[4].mxu1 %v375_v51 }
 0x109   :  { %v349_v61 = vadd.f32 %v763_v24, %v254_v60  ;;  %v364_v63 = vmax.f32 %v348_v56, 0.0 }
 0x10a   :  { %v367_v62 = vmax.f32 %v351_v59, 0.0 }
 0x10b   :  { %v365_v0 = vmax.f32 %v349_v61, 0.0 }
 0x10c   :  { %v377_v1 = vpack.c.bf16 %v367_v62, %v366_v58 }
 0x10d   :  { %v376_v2 = vpack.c.bf16 %v365_v0, %v364_v63  ;;  %v835_v3 = vpop.f32.mrb[12].mxu0 }
 0x10e   :  { %v354_v4 = vadd.f32 %v835_v3, %v763_v24  ;;  %v267_v5 = vpop.f32.mrb[13].mxu0 }
 0x10f   :  { %v352_v6 = vadd.f32 %v763_v24, %v267_v5  ;;  %v836_v7 = vpop.f32.mrb[14].mxu0  ;;  %861 = vmatprep.mubr.bf16.mxu1 %v376_v2 }
 0x110   :  { %v370_v8 = vmax.f32 %v354_v4, 0.0  ;;  %v355_v9 = vadd.f32 %v836_v7, %v763_v24  ;;  %v270_v10 = vpop.f32.mrb[15].mxu0  ;;  %862 = vmatmul.mubr.bf16.gmra.mrb[8].mxu1 %v377_v1 }
 0x111   :  { %v353_v11 = vadd.f32 %v763_v24, %v270_v10  ;;  %v368_v13 = vmax.f32 %v352_v6, 0.0 }
 0x112   :  { %v371_v12 = vmax.f32 %v355_v9, 0.0 }
 0x113   :  { %v369_v14 = vmax.f32 %v353_v11, 0.0 }
 0x114   :  { %v379_v15 = vpack.c.bf16 %v371_v12, %v370_v8 }
 0x115   :  { %v378_v16 = vpack.c.bf16 %v369_v14, %v368_v13 }
 0x117   :  { %865 = vmatprep.mubr.bf16.mxu1 %v378_v16 }
 0x118   :  { %866 = vmatmul.mubr.bf16.gmra.mrb[12].mxu1 %v379_v15 }
 0x1d3   :  { %v855_v20 = vpop.f32.mrb[0].mxu1 }
 0x1d4   :  { %v494_v21 = vadd.f32 %v855_v20, %v764_v19  ;;  %v485_v22 = vpop.f32.mrb[1].mxu1 }
 0x1d5   :  { %v486_v23 = vadd.f32 %v764_v19, %v485_v22  ;;  %v856_v24 = vpop.f32.mrb[2].mxu1 }
 0x1d6   :  { %v497_v25 = vadd.f32 %v856_v24, %v764_v19  ;;  %v488_v26 = vpop.f32.mrb[3].mxu1  ;;  %v553_v27 = vsel %vm550_vm0, %v494_v21, -1e+30 }
 0x1d7   :  { %v489_v28 = vadd.f32 %v764_v19, %v488_v26  ;;  %571 = vmax.xlane.f32.xlu1 %v553_v27  ;;  %v551_v29 = vsel %vm550_vm0, %v486_v23, -1e+30 }
 0x1d8   :  { %567 = vmax.xlane.f32.xlu0 %v551_v29  ;;  %v554_v30 = vsel %vm550_vm0, %v497_v25, -1e+30 }
 0x1d9   :  { %v552_v32 = vsel %vm550_vm0, %v489_v28, -1e+30 }
 0x1db   :  { %573 = vmax.xlane.f32.xlu1 %v554_v30  ;;  %v859_v31 = vpop.f32.mrb[4].mxu1 }
 0x1dc   :  { %v510_v33 = vadd.f32 %v859_v31, %v764_v19  ;;  %569 = vmax.xlane.f32.xlu0 %v552_v32  ;;  %v501_v34 = vpop.f32.mrb[5].mxu1 }
 0x1dd   :  { %v860_v35 = vpop.f32.mrb[6].mxu1  ;;  %v502_v39 = vadd.f32 %v764_v19, %v501_v34 }
 0x1de   :  { %v513_v36 = vadd.f32 %v860_v35, %v764_v19  ;;  %v504_v37 = vpop.f32.mrb[7].mxu1  ;;  %v557_v38 = vsel %vm550_vm0, %v510_v33, -1e+30 }
 0x1df   :  { %v505_v40 = vadd.f32 %v764_v19, %v504_v37  ;;  %v555_v43 = vsel %vm550_vm0, %v502_v39, -1e+30 }
 0x1e0   :  { %579 = vmax.xlane.f32.xlu0 %v557_v38  ;;  %v558_v41 = vsel %vm550_vm0, %v513_v36, -1e+30 }
 0x1e1   :  { %581 = vmax.xlane.f32.xlu1 %v558_v41  ;;  %v556_v46 = vsel %vm550_vm0, %v505_v40, -1e+30 }
 0x1e3   :  { %v863_v42 = vpop.f32.mrb[8].mxu1 }
 0x1e4   :  { %v526_v44 = vadd.f32 %v863_v42, %v764_v19  ;;  %575 = vmax.xlane.f32.xlu0 %v555_v43  ;;  %v517_v45 = vpop.f32.mrb[9].mxu1 }
 0x1e5   :  { %577 = vmax.xlane.f32.xlu1 %v556_v46  ;;  %v864_v47 = vpop.f32.mrb[10].mxu1  ;;  %v518_v51 = vadd.f32 %v764_v19, %v517_v45 }
 0x1e6   :  { %v529_v48 = vadd.f32 %v864_v47, %v764_v19  ;;  %v520_v49 = vpop.f32.mrb[11].mxu1  ;;  %v561_v50 = vsel %vm550_vm0, %v526_v44, -1e+30 }
 0x1e7   :  { %v521_v52 = vadd.f32 %v764_v19, %v520_v49  ;;  %v1090_v55 = vsel %vm550_vm0, %v518_v51, -1e+30 }
 0x1e8   :  { %587 = vmax.xlane.f32.xlu0 %v561_v50  ;;  %v562_v53 = vsel %vm550_vm0, %v529_v48, -1e+30 }
 0x1e9   :  { %589 = vmax.xlane.f32.xlu1 %v562_v53  ;;  %v1095_v57 = vsel %vm550_vm0, %v521_v52, -1e+30 }
 0x1eb   :  { %v867_v54 = vpop.f32.mrb[12].mxu1 }
 0x1ec   :  { %583 = vmax.xlane.f32.xlu0 %v1090_v55  ;;  %v533_v56 = vpop.f32.mrb[13].mxu1  ;;  %v542_v61 = vadd.f32 %v867_v54, %v764_v19 }
 0x1ed   :  { %v534_v58 = vadd.f32 %v764_v19, %v533_v56  ;;  %585 = vmax.xlane.f32.xlu1 %v1095_v57  ;;  %v868_v59 = vpop.f32.mrb[14].mxu1 }
 0x1ee   :  { %v536_v60 = vpop.f32.mrb[15].mxu1  ;;  %v545_v0 = vadd.f32 %v868_v59, %v764_v19  ;;  %v1110_v2 = vsel %vm550_vm0, %v542_v61, -1e+30 }
 0x1ef   :  { %v537_v62 = vadd.f32 %v764_v19, %v536_v60  ;;  %v1100_v63 = vsel %vm550_vm0, %v534_v58, -1e+30 }
 0x1f0   :  { %591 = vmax.xlane.f32.xlu0 %v1100_v63  ;;  %v1115_v3 = vsel %vm550_vm0, %v545_v0, -1e+30 }
 0x1f1   :  { %v1105_v1 = vsel %vm550_vm0, %v537_v62, -1e+30 }
 0x1f2   :  { %593 = vmax.xlane.f32.xlu1 %v1105_v1 }
 0x1f4   :  { %595 = vmax.xlane.f32.xlu0 %v1110_v2 }
 0x1f6   :  { %597 = vmax.xlane.f32.xlu1 %v1115_v3 }
 0x264   :  { %v572_v4 = vpop.xlane.xlu1 %571 }
 0x265   :  { %v1118_v5 = vsub.f32 %v553_v27, %v572_v4  ;;  %v568_v6 = vpop.xlane.xlu0 %567 }
 0x266   :  { %v1120_v7 = vsub.f32 %v551_v29, %v568_v6 }
 0x267   :  { %v619_v8 = vmul.f32 1.442695, %v1118_v5 }
 0x268   :  { %v615_v9 = vmul.f32 1.442695, %v1120_v7  ;;  %v574_v10 = vpop.xlane.xlu1 %573 }
 0x269   :  { %893 = vpow2.f32 %v619_v8  ;;  %v1124_v11 = vsub.f32 %v554_v30, %v574_v10  ;;  %v570_v12 = vpop.xlane.xlu0 %569 }
 0x26a   :  { %v1126_v13 = vsub.f32 %v552_v32, %v570_v12  ;;  %895 = vpow2.f32 %v615_v9 }
 0x26b   :  { %v621_v14 = vmul.f32 1.442695, %v1124_v11 }
 0x26c   :  { %v617_v15 = vmul.f32 1.442695, %v1126_v13 }
 0x26d   :  { %897 = vpow2.f32 %v621_v14  ;;  %v580_v16 = vpop.xlane.xlu0 %579 }
 0x26e   :  { %v1130_v17 = vsub.f32 %v557_v38, %v580_v16  ;;  %v582_v18 = vpop.xlane.xlu1 %581  ;;  %899 = vpow2.f32 %v617_v15 }
 0x26f   :  { %v1132_v19 = vsub.f32 %v558_v41, %v582_v18 }
 0x270   :  { %v627_v20 = vmul.f32 1.442695, %v1130_v17 }
 0x271   :  { %v629_v21 = vmul.f32 1.442695, %v1132_v19  ;;  %v576_v22 = vpop.xlane.xlu0 %575 }
 0x272   :  { %901 = vpow2.f32 %v627_v20  ;;  %v1136_v23 = vsub.f32 %v555_v43, %v576_v22  ;;  %v578_v24 = vpop.xlane.xlu1 %577 }
 0x273   :  { %v894_v25 = vpop.eup %893  ;;  %v1138_v26 = vsub.f32 %v556_v46, %v578_v24  ;;  %903 = vpow2.f32 %v629_v21 }
 0x274   :  { %v623_v27 = vmul.f32 1.442695, %v1136_v23  ;;  %651 = vadd.xlane.f32.xlu0 %v894_v25  ;;  %v896_v30 = vpop.eup %895 }
 0x275   :  { %v625_v28 = vmul.f32 1.442695, %v1138_v26  ;;  %v588_v29 = vpop.xlane.xlu0 %587 }
 0x276   :  { %905 = vpow2.f32 %v623_v27  ;;  %v1142_v31 = vsub.f32 %v561_v50, %v588_v29  ;;  %v590_v32 = vpop.xlane.xlu1 %589 }
 0x277   :  { %v898_v33 = vpop.eup %897  ;;  %v1144_v34 = vsub.f32 %v562_v53, %v590_v32  ;;  %907 = vpow2.f32 %v625_v28 }
 0x278   :  { %v635_v35 = vmul.f32 1.442695, %v1142_v31  ;;  %653 = vadd.xlane.f32.xlu1 %v898_v33  ;;  %647 = vadd.xlane.f32.xlu0 %v896_v30  ;;  %v900_v40 = vpop.eup %899 }
 0x279   :  { %v637_v36 = vmul.f32 1.442695, %v1144_v34  ;;  %v584_v37 = vpop.xlane.xlu0 %583 }
 0x27a   :  { %909 = vpow2.f32 %v635_v35  ;;  %v1149_v38 = vsub.f32 %v1090_v55, %v584_v37  ;;  %v586_v39 = vpop.xlane.xlu1 %585 }
 0x27b   :  { %v1152_v41 = vsub.f32 %v1095_v57, %v586_v39  ;;  %911 = vpow2.f32 %v637_v36 }
 0x27c   :  { %v902_v42 = vpop.eup %901  ;;  %v631_v43 = vmul.f32 1.442695, %v1149_v38  ;;  %649 = vadd.xlane.f32.xlu1 %v900_v40 }
 0x27d   :  { %v633_v44 = vmul.f32 1.442695, %v1152_v41  ;;  %659 = vadd.xlane.f32.xlu0 %v902_v42  ;;  %v592_v45 = vpop.xlane.xlu0 %591  ;;  %v904_v47 = vpop.eup %903 }
 0x27e   :  { %913 = vpow2.f32 %v631_v43  ;;  %v1157_v46 = vsub.f32 %v1100_v63, %v592_v45 }
 0x27f   :  { %v594_v48 = vpop.xlane.xlu1 %593  ;;  %915 = vpow2.f32 %v633_v44 }
 0x280   :  { %v906_v49 = vpop.eup %905  ;;  %v639_v50 = vmul.f32 1.442695, %v1157_v46  ;;  %v1161_v51 = vsub.f32 %v1105_v1, %v594_v48  ;;  %661 = vadd.xlane.f32.xlu1 %v904_v47 }
 0x281   :  { %655 = vadd.xlane.f32.xlu0 %v906_v49  ;;  %v596_v52 = vpop.xlane.xlu0 %595  ;;  %v908_v55 = vpop.eup %907 }
 0x282   :  { %917 = vpow2.f32 %v639_v50  ;;  %v641_v53 = vmul.f32 1.442695, %v1161_v51  ;;  %v1165_v54 = vsub.f32 %v1110_v2, %v596_v52 }
 0x283   :  { %v598_v56 = vpop.xlane.xlu1 %597 }
 0x284   :  { %v910_v57 = vpop.eup %909  ;;  %919 = vpow2.f32 %v641_v53  ;;  %v643_v58 = vmul.f32 1.442695, %v1165_v54  ;;  %v1169_v59 = vsub.f32 %v1115_v3, %v598_v56  ;;  %657 = vadd.xlane.f32.xlu1 %v908_v55 }
 0x285   :  { %667 = vadd.xlane.f32.xlu0 %v910_v57  ;;  %v912_v61 = vpop.eup %911 }
 0x286   :  { %921 = vpow2.f32 %v643_v58  ;;  %v645_v60 = vmul.f32 1.442695, %v1169_v59 }
 0x288   :  { %v914_v62 = vpop.eup %913  ;;  %923 = vpow2.f32 %v645_v60  ;;  %669 = vadd.xlane.f32.xlu1 %v912_v61 }
 0x289   :  { %663 = vadd.xlane.f32.xlu0 %v914_v62  ;;  %v916_v63 = vpop.eup %915 }
 0x28c   :  { %v918_v0 = vpop.eup %917  ;;  %665 = vadd.xlane.f32.xlu1 %v916_v63 }
 0x28d   :  { %671 = vadd.xlane.f32.xlu0 %v918_v0 }
 0x28e   :  { %v920_v1 = vpop.eup %919 }
 0x290   :  { %v922_v2 = vpop.eup %921  ;;  %673 = vadd.xlane.f32.xlu1 %v920_v1 }
 0x291   :  { %675 = vadd.xlane.f32.xlu0 %v922_v2 }
 0x292   :  { %v924_v3 = vpop.eup %923 }
 0x294   :  { %677 = vadd.xlane.f32.xlu1 %v924_v3 }
 0x301   :  { %v652_v4 = vpop.xlane.xlu0 %651 }
 0x302   :  { %925 = vlog2.f32 %v652_v4 }
 0x305   :  { %v654_v6 = vpop.xlane.xlu1 %653  ;;  %v648_v8 = vpop.xlane.xlu0 %647 }
 0x306   :  { %927 = vlog2.f32 %v654_v6 }
 0x307   :  { %929 = vlog2.f32 %v648_v8 }
 0x309   :  { %v650_v9 = vpop.xlane.xlu1 %649 }
 0x30a   :  { %931 = vlog2.f32 %v650_v9  ;;  %v660_v10 = vpop.xlane.xlu0 %659 }
 0x30b   :  { %933 = vlog2.f32 %v660_v10 }
 0x30c   :  { %v926_v12 = vpop.eup %925 }
 0x30d   :  { %v684_v14 = vmul.f32 0.6931472, %v926_v12  ;;  %v662_v15 = vpop.xlane.xlu1 %661 }
 0x30e   :  { %935 = vlog2.f32 %v662_v15  ;;  %v656_v16 = vpop.xlane.xlu0 %655 }
 0x30f   :  { %v713_v18 = vsub.f32 %v1118_v5, %v684_v14  ;;  %937 = vlog2.f32 %v656_v16 }
 0x310   :  { %v928_v20 = vpop.eup %927 }
 0x311   :  { %v930_v21 = vpop.eup %929  ;;  %729 = vst [vmem:[%s1241_s5 + $0x10] sm:$0xff] %v713_v18  ;;  %v686_v22 = vmul.f32 0.6931472, %v928_v20  ;;  %v658_v24 = vpop.xlane.xlu1 %657 }
 0x312   :  { %v680_v25 = vmul.f32 0.6931472, %v930_v21  ;;  %939 = vlog2.f32 %v658_v24  ;;  %v668_v27 = vpop.xlane.xlu0 %667 }
 0x313   :  { %v714_v28 = vsub.f32 %v1124_v11, %v686_v22  ;;  %941 = vlog2.f32 %v668_v27 }
 0x314   :  { %v932_v29 = vpop.eup %931  ;;  %v711_v30 = vsub.f32 %v1120_v7, %v680_v25 }
 0x315   :  { %v934_v32 = vpop.eup %933  ;;  %730 = vst [vmem:[%s1241_s5 + $0x18] sm:$0xff] %v714_v28  ;;  %v682_v5 = vmul.f32 0.6931472, %v932_v29  ;;  %v670_v33 = vpop.xlane.xlu1 %669 }
 0x316   :  { %727 = vst [vmem:[%s1241_s5] sm:$0xff] %v711_v30  ;;  %v692_v35 = vmul.f32 0.6931472, %v934_v32  ;;  %943 = vlog2.f32 %v670_v33  ;;  %v664_v36 = vpop.xlane.xlu0 %663 }
 0x317   :  { %v712_v11 = vsub.f32 %v1126_v13, %v682_v5  ;;  %945 = vlog2.f32 %v664_v36 }
 0x318   :  { %v936_v37 = vpop.eup %935  ;;  %v717_v7 = vsub.f32 %v1130_v17, %v692_v35 }
 0x319   :  { %v938_v39 = vpop.eup %937  ;;  %728 = vst [vmem:[%s1241_s5 + $0x8] sm:$0xff] %v712_v11  ;;  %v694_v40 = vmul.f32 0.6931472, %v936_v37  ;;  %v666_v42 = vpop.xlane.xlu1 %665 }
 0x31a   :  { %733 = vst [vmem:[%s1241_s5 + $0x30] sm:$0xff] %v717_v7  ;;  %v688_v43 = vmul.f32 0.6931472, %v938_v39  ;;  %947 = vlog2.f32 %v666_v42  ;;  %v672_v44 = vpop.xlane.xlu0 %671 }
 0x31b   :  { %v718_v13 = vsub.f32 %v1132_v19, %v694_v40  ;;  %949 = vlog2.f32 %v672_v44 }
 0x31c   :  { %v940_v45 = vpop.eup %939  ;;  %v715_v17 = vsub.f32 %v1136_v23, %v688_v43 }
 0x31d   :  { %v942_v47 = vpop.eup %941  ;;  %734 = vst [vmem:[%s1241_s5 + $0x38] sm:$0xff] %v718_v13  ;;  %v690_v48 = vmul.f32 0.6931472, %v940_v45  ;;  %v674_v49 = vpop.xlane.xlu1 %673 }
 0x31e   :  { %731 = vst [vmem:[%s1241_s5 + $0x20] sm:$0xff] %v715_v17  ;;  %v700_v50 = vmul.f32 0.6931472, %v942_v47  ;;  %951 = vlog2.f32 %v674_v49  ;;  %v676_v52 = vpop.xlane.xlu0 %675 }
 0x31f   :  { %v716_v19 = vsub.f32 %v1138_v26, %v690_v48  ;;  %953 = vlog2.f32 %v676_v52 }
 0x320   :  { %v944_v53 = vpop.eup %943  ;;  %v721_v23 = vsub.f32 %v1142_v31, %v700_v50 }
 0x321   :  { %v946_v55 = vpop.eup %945  ;;  %732 = vst [vmem:[%s1241_s5 + $0x28] sm:$0xff] %v716_v19  ;;  %v702_v56 = vmul.f32 0.6931472, %v944_v53  ;;  %v678_v57 = vpop.xlane.xlu1 %677 }
 0x322   :  { %737 = vst [vmem:[%s1241_s5 + $0x50] sm:$0xff] %v721_v23  ;;  %v696_v58 = vmul.f32 0.6931472, %v946_v55  ;;  %955 = vlog2.f32 %v678_v57 }
 0x323   :  { %v722_v60 = vsub.f32 %v1144_v34, %v702_v56 }
 0x324   :  { %v948_v26 = vpop.eup %947  ;;  %v719_v61 = vsub.f32 %v1149_v38, %v696_v58 }
 0x325   :  { %v950_v62 = vpop.eup %949  ;;  %738 = vst [vmem:[%s1241_s5 + $0x58] sm:$0xff] %v722_v60  ;;  %v698_v31 = vmul.f32 0.6931472, %v948_v26 }
 0x326   :  { %735 = vst [vmem:[%s1241_s5 + $0x40] sm:$0xff] %v719_v61  ;;  %v704_v63 = vmul.f32 0.6931472, %v950_v62 }
 0x327   :  { %v720_v0 = vsub.f32 %v1152_v41, %v698_v31 }
 0x328   :  { %v952_v1 = vpop.eup %951  ;;  %v723_v2 = vsub.f32 %v1157_v46, %v704_v63 }
 0x329   :  { %v954_v34 = vpop.eup %953  ;;  %736 = vst [vmem:[%s1241_s5 + $0x48] sm:$0xff] %v720_v0  ;;  %v706_v38 = vmul.f32 0.6931472, %v952_v1 }
 0x32a   :  { %739 = vst [vmem:[%s1241_s5 + $0x60] sm:$0xff] %v723_v2  ;;  %v708_v3 = vmul.f32 0.6931472, %v954_v34 }
 0x32b   :  { %v724_v4 = vsub.f32 %v1161_v51, %v706_v38 }
 0x32c   :  { %v956_v6 = vpop.eup %955  ;;  %v725_v8 = vsub.f32 %v1165_v54, %v708_v3 }
 0x32d   :  { %740 = vst [vmem:[%s1241_s5 + $0x68] sm:$0xff] %v724_v4  ;;  %v710_v41 = vmul.f32 0.6931472, %v956_v6 }
 0x32e   :  { %741 = vst [vmem:[%s1241_s5 + $0x70] sm:$0xff] %v725_v8 }
 0x32f   :  { %v726_v46 = vsub.f32 %v1169_v59, %v710_v41 }
 0x331   :  { %742 = vst [vmem:[%s1241_s5 + $0x78] sm:$0xff] %v726_v46 }

</bundles_post_ra>
